<compile_context>
chip_gen: v7x
topology: tpu7x:2x2x1
jax: 0.10.0
libtpu: 0.0.40
codegen_flags: <defaults>
</compile_context>

<pallas_src>
import math

import jax
import jax.numpy as jnp
from jax.experimental import pallas as pl
from jax.experimental.pallas import tpu as pltpu


def _ceil_to(x: int, m: int) -> int:
    return ((x + m - 1) // m) * m


def _largest_aligned_divisor(total: int, align: int, cap: int) -> int:
    """Largest multiple of `align` that divides `total` and is <= cap (0 if none)."""
    d = (min(cap, total) // align) * align
    while d >= align:
        if total % d == 0:
            return d
        d -= align
    return 0


# ----------------------------- kernels -------------------------------------


def _fc_kernel_single_k(x_ref, w_ref, b_ref, o_ref):
    """Single K step: one MXU pass + fused bias, no branches, no scratch."""
    o_ref[...] = (jnp.dot(x_ref[...], w_ref[...],
                          preferred_element_type=jnp.float32)
                  + b_ref[...]).astype(o_ref.dtype)


def _fc_kernel_direct(x_ref, w_ref, b_ref, o_ref):
    """K-tiled, f32 output: accumulate directly into the resident output block."""
    k = pl.program_id(2)

    @pl.when(k == 0)
    def _():
        o_ref[...] = jnp.zeros_like(o_ref)

    o_ref[...] += jnp.dot(x_ref[...], w_ref[...],
                          preferred_element_type=jnp.float32)

    @pl.when(k == pl.num_programs(2) - 1)
    def _():
        o_ref[...] += b_ref[...]


def _fc_kernel_acc(x_ref, w_ref, b_ref, o_ref, acc_ref):
    """K-tiled, non-f32 output: f32 VMEM accumulator + cast epilogue."""
    k = pl.program_id(2)

    @pl.when(k == 0)
    def _():
        acc_ref[...] = jnp.zeros_like(acc_ref)

    acc_ref[...] += jnp.dot(x_ref[...], w_ref[...],
                            preferred_element_type=jnp.float32)

    @pl.when(k == pl.num_programs(2) - 1)
    def _():
        o_ref[...] = (acc_ref[...] + b_ref[...]).astype(o_ref.dtype)


# ----------------------------- wrapper --------------------------------------


def fully_connected(x, weight, bias=None, *, tm_max=512, tn_max=1024, tk_max=512):
    """out[..., n] = sum_k x[..., k] * weight[k, n] (+ bias[n])."""
    K, N = weight.shape
    lead = x.shape[:-1]
    M = int(math.prod(lead)) if lead else 1
    x2 = x.reshape(M, K)

    out_dtype = x.dtype
    x_isz = jnp.dtype(x.dtype).itemsize
    w_isz = jnp.dtype(weight.dtype).itemsize
    o_isz = jnp.dtype(out_dtype).itemsize

    # ---- K / N tiling: lane-dense multiples of 128 when axis >= 128;
    # ---- otherwise a single full-extent block (no padding, no zero-multiplies).
    if K < 128:
        Kp, tk = K, K
    else:
        Kp = _ceil_to(K, 128)
        tk = _largest_aligned_divisor(Kp, 128, tk_max) or 128

    if N < 128:
        Np, tn = N, N
    else:
        Np = _ceil_to(N, 128)
        tn = _largest_aligned_divisor(Np, 128, tn_max) or 128

    # ---- Weight-resident fast path: small weight stays in VMEM, K axis -> 1.
    if Kp * Np * w_isz <= (8 << 20):
        tk, tn = Kp, Np

    # ---- M tiling: no pad when M fits in one tile; otherwise prefer a divisor.
    if M <= tm_max:
        tm, Mp = M, M
    else:
        tm = 0
        d = (tm_max // 8) * 8
        while d >= 64:
            if M % d == 0:
                tm = d
                break
            d -= 8
        if tm:
            Mp = M
        else:
            tm = (tm_max // 8) * 8
            Mp = _ceil_to(M, tm)

    # ---- Megacore: only split when fewer than 2 parallel steps exist, and
    # ---- prefer the N axis (keeps the MXU full-height on M).
    if (Mp // tm) * (Np // tn) < 2 and tn % 256 == 0 and Np % (tn // 2) == 0:
        tn //= 2

    n_k = Kp // tk
    grid = (Mp // tm, Np // tn, n_k)

    # ---- VMEM budget (double-buffered blocks + optional accumulator).
    use_acc = n_k > 1 and jnp.dtype(out_dtype) != jnp.dtype(jnp.float32)
    vmem_need = 2 * (tm * tk * x_isz + tk * tn * w_isz + tn * w_isz
                     + tm * tn * o_isz) + (tm * tn * 4 if use_acc else 0)
    vmem_limit = min(max(32 << 20, _ceil_to(vmem_need + (4 << 20), 1 << 20)),
                     64 << 20)

    # ---- Zero-fill padding only where actually required.
    x_p = x2 if (Mp == M and Kp == K) else jnp.pad(x2, ((0, Mp - M), (0, Kp - K)))
    w_p = weight if (Kp == K and Np == N) else jnp.pad(weight,
                                                       ((0, Kp - K), (0, Np - N)))
    if bias is None:
        b_p = jnp.zeros((1, Np), dtype=weight.dtype)
    else:
        b_p = (bias if Np == N else jnp.pad(bias, (0, Np - N))).reshape(1, Np)

    # ---- Kernel / scratch selection.
    if n_k == 1:
        kernel, scratch = _fc_kernel_single_k, []
    elif not use_acc:
        kernel, scratch = _fc_kernel_direct, []
    else:
        kernel, scratch = _fc_kernel_acc, [pltpu.VMEM((tm, tn), jnp.float32)]

    cost = pl.CostEstimate(
        flops=2 * M * K * N,
        transcendentals=0,
        bytes_accessed=(M * K * x_isz + K * N * w_isz
                        + (N * w_isz if bias is not None else 0)
                        + M * N * o_isz),
    )

    out_p = pl.pallas_call(
        kernel,
        out_shape=jax.ShapeDtypeStruct((Mp, Np), out_dtype),
        grid_spec=pltpu.PrefetchScalarGridSpec(
            num_scalar_prefetch=0,
            grid=grid,
            in_specs=[
                pl.BlockSpec((tm, tk), lambda i, j, k: (i, k)),   # activations
                pl.BlockSpec((tk, tn), lambda i, j, k: (k, j)),   # weight
                pl.BlockSpec((1, tn), lambda i, j, k: (0, j)),    # bias
            ],
            out_specs=pl.BlockSpec((tm, tn), lambda i, j, k: (i, j)),
            scratch_shapes=scratch,
        ),
        compiler_params=pltpu.CompilerParams(
            dimension_semantics=("parallel", "parallel", "arbitrary"),
            vmem_limit_bytes=vmem_limit),
        cost_estimate=cost,
    )(x_p, w_p, b_p)

    out = out_p if (Mp == M and Np == N) else out_p[:M, :N]
    return out.reshape(*lead, N)


def fully_connected_reference(x, weight, bias=None):
    """Pure-JAX reference mirroring the PyTorch forward."""
    out = jnp.matmul(x, weight)
    if bias is not None:
        out = out + bias
    return out


if __name__ == "__main__":
    # Small shapes consistent with FullyConnected(in_features, out_features)
    # applied to a (batch, node_n, in_features) tensor.
    B, node_n, in_features, out_features = 2, 48, 64, 128

    key = jax.random.PRNGKey(0)
    ks = jax.random.split(key, 3)

    stdv = 1.0 / math.sqrt(out_features)   # matches reset_parameters()
    x = jax.random.normal(ks[0], (B, node_n, in_features), dtype=jnp.float32)
    weight = jax.random.uniform(ks[1], (in_features, out_features),
                                minval=-stdv, maxval=stdv, dtype=jnp.float32)
    bias = jax.random.uniform(ks[2], (out_features,),
                              minval=-stdv, maxval=stdv, dtype=jnp.float32)

    out = fully_connected(x, weight, bias)
    out = jax.block_until_ready(out)

    ref = fully_connected_reference(x, weight, bias)
    assert out.shape == (B, node_n, out_features)
    assert jnp.allclose(out, ref, atol=1e-5, rtol=1e-5), \
        f"max abs err {jnp.max(jnp.abs(out - ref))}"

    # Also exercise the bias=None path once (module supports bias=False).
    out_nb = jax.block_until_ready(fully_connected(x, weight, None))
    ref_nb = fully_connected_reference(x, weight, None)
    assert jnp.allclose(out_nb, ref_nb, atol=1e-5, rtol=1e-5)

    print("KERNEL_OK")
</pallas_src>

<mosaic_0001>
module attributes {stable_mosaic.version = 11 : i64} {
  func.func @_fc_kernel_single_k(%arg0: i32, %arg1: i32, %arg2: i32, %arg3: memref<96x64xf32, #tpu.memory_space<vmem>>, %arg4: memref<64x128xf32, #tpu.memory_space<vmem>>, %arg5: memref<1x128xf32, #tpu.memory_space<vmem>>, %arg6: memref<96x128xf32, #tpu.memory_space<vmem>>) attributes {dimension_semantics = [#tpu.dimension_semantics<parallel>, #tpu.dimension_semantics<parallel>, #tpu.dimension_semantics<arbitrary>], iteration_bounds = array<i64: 1, 1, 1>, scalar_prefetch = 0 : i64, scratch_operands = 0 : i64, tpu.core_type = #tpu.core_type<tc>, window_params = [{transform_indices = @transform_0, window_bounds = array<i64: 96, 64>}, {transform_indices = @transform_1, window_bounds = array<i64: 64, 128>}, {transform_indices = @transform_2, window_bounds = array<i64: 1, 128>}, {transform_indices = @transform_3, window_bounds = array<i64: 96, 128>}]} {
    %c0 = arith.constant 0 : index
    %c0_0 = arith.constant 0 : index
    %0 = vector.load %arg3[%c0, %c0_0] : memref<96x64xf32, #tpu.memory_space<vmem>>, vector<96x64xf32>
    %c0_1 = arith.constant 0 : index
    %c0_2 = arith.constant 0 : index
    %1 = vector.load %arg4[%c0_1, %c0_2] : memref<64x128xf32, #tpu.memory_space<vmem>>, vector<64x128xf32>
    %cst = arith.constant dense<0.000000e+00> : vector<96x128xf32>
    %2 = tpu.matmul %0, %1, %cst {dimension_numbers = #tpu.dot_dimension_numbers<[1], [0], [0], [1], [0, 0, 1, 1], [], []>} : vector<96x64xf32>, vector<64x128xf32>, vector<96x128xf32> -> vector<96x128xf32>
    %c0_3 = arith.constant 0 : index
    %c0_4 = arith.constant 0 : index
    %3 = vector.load %arg5[%c0_3, %c0_4] : memref<1x128xf32, #tpu.memory_space<vmem>>, vector<1x128xf32>
    %4 = vector.broadcast %3 : vector<1x128xf32> to vector<96x128xf32>
    %5 = arith.addf %2, %4 : vector<96x128xf32>
    %c0_5 = arith.constant 0 : index
    %c0_6 = arith.constant 0 : index
    %6 = vector.load %arg6[%c0_5, %c0_6] : memref<96x128xf32, #tpu.memory_space<vmem>>, vector<96x128xf32>
    tpu.vector_store %arg6[%c0_5, %c0_6], %5 {strides = array<i32>} : memref<96x128xf32, #tpu.memory_space<vmem>>, vector<96x128xf32>,
    return
  }
  func.func @transform_0(%arg0: i32, %arg1: i32, %arg2: i32) -> (i32, i32) {
    %c0_i32 = arith.constant 0 : i32
    return %arg0, %arg2 : i32, i32
  }
  func.func @transform_1(%arg0: i32, %arg1: i32, %arg2: i32) -> (i32, i32) {
    %c0_i32 = arith.constant 0 : i32
    return %arg2, %arg1 : i32, i32
  }
  func.func @transform_2(%arg0: i32, %arg1: i32, %arg2: i32) -> (i32, i32) {
    %c0_i32 = arith.constant 0 : i32
    %c0_i32_0 = arith.constant 0 : i32
    return %c0_i32, %arg1 : i32, i32
  }
  func.func @transform_3(%arg0: i32, %arg1: i32, %arg2: i32) -> (i32, i32) {
    %c0_i32 = arith.constant 0 : i32
    return %arg0, %arg1 : i32, i32
  }
}

</mosaic_0001>

<bundles_post_ra>
// kernel: tpu_custom_call.1
= control target key start
LH: loop header
LB: loop body
LE: loop exit
PB: predicated region body
PF: predicated region fallthrough
CT: control target
= control target key end

     0   :  { %vm42_vm0 = vcmask 523264   ;;  %s460_s0 = inlined_call_operand.vmem [shape: f32[96,64], index: 0, kind: input, shape index: {}]   ;;  %s461_s1 = inlined_call_operand.vmem [shape: f32[64,128], index: 1, kind: input, shape index: {}]   ;;  %s462_s2 = inlined_call_operand.vmem [shape: f32[1,128], index: 2, kind: input, shape index: {}]   ;;  %s463_s3 = inlined_call_operand.hbm [shape: f32[96,128], index: 3, kind: output, shape index: {}]  }
   0x1   :  { %v27_v0 = vld [vmem:[%s461_s1] sm:$0xff]  ;;  %v28_v1 = vld [vmem:[%s461_s1 + $0x8] sm:$0xff]  ;;  %v29_v2 = vld [vmem:[%s461_s1 + $0x10] sm:$0xff] }
   0x2   :  { %v299_v3 = vpack.c.bf16 %v28_v1, %v27_v0  ;;  %v30_v4 = vld [vmem:[%s461_s1 + $0x18] sm:$0xff]  ;;  %v31_v6 = vld [vmem:[%s461_s1 + $0x20] sm:$0xff]  ;;  %v32_v7 = vld [vmem:[%s461_s1 + $0x28] sm:$0xff] }
   0x3   :  { %v303_v5 = vpack.c.bf16 %v30_v4, %v29_v2  ;;  %v15_v8 = vld [vmem:[%s460_s0] sm:$0xff]  ;;  %v21_v9 = vld [vmem:[%s460_s0 + $0x30] sm:$0xff]  ;;  %v307_v10 = vpack.c.bf16 %v32_v7, %v31_v6  ;;  %v34_v12 = vld [vmem:[%s461_s1 + $0x38] sm:$0xff] }
   0x4   :  { %300 = vmatprep.subr.bf16.mxu0 %v299_v3  ;;  %315 = vmatprep.subr.bf16.mxu1 %v299_v3  ;;  %v33_v11 = vld [vmem:[%s461_s1 + $0x30] sm:$0xff] }
   0x5   :  { %302 = vmatpush3.bf16.msra.mxu0 %v299_v3  ;;  %319 = vmatpush3.bf16.msra.mxu1 %v299_v3 }
   0x6   :  { %304 = vmatprep.subr.bf16.mxu0 %v303_v5  ;;  %316 = vmatprep.subr.bf16.mxu1 %v303_v5 }
   0x7   :  { %281 = vmatprep.mubr.msk.f32.mxu0 %vm42_vm0, %v15_v8  ;;  %290 = vmatprep.mubr.msk.f32.mxu1 %vm42_vm0, %v21_v9 }
   0x8   :  { %8 = vsyncpa [#allocation3], 0  ;;  %v311_v13 = vpack.c.bf16 %v34_v12, %v33_v11  ;;  %v16_v14 = vld [vmem:[%s460_s0 + $0x8] sm:$0xff]  ;;  %v22_v15 = vld [vmem:[%s460_s0 + $0x38] sm:$0xff] }
   0x9   :  { %306 = vmatpush3.bf16.msra.mxu0 %v303_v5  ;;  %320 = vmatpush3.bf16.msra.mxu1 %v303_v5  ;;  %v17_v16 = vld [vmem:[%s460_s0 + $0x10] sm:$0xff]  ;;  %v23_v17 = vld [vmem:[%s460_s0 + $0x40] sm:$0xff]  ;;  %v18_v18 = vld [vmem:[%s460_s0 + $0x18] sm:$0xff] }
   0xa   :  { %308 = vmatprep.subr.bf16.mxu0 %v307_v10  ;;  %317 = vmatprep.subr.bf16.mxu1 %v307_v10  ;;  %v24_v19 = vld [vmem:[%s460_s0 + $0x48] sm:$0xff]  ;;  %v19_v20 = vld [vmem:[%s460_s0 + $0x20] sm:$0xff]  ;;  %v25_v21 = vld [vmem:[%s460_s0 + $0x50] sm:$0xff] }
   0xb   :  { %v20_v22 = vld [vmem:[%s460_s0 + $0x28] sm:$0xff]  ;;  %v26_v23 = vld [vmem:[%s460_s0 + $0x58] sm:$0xff]  ;;  %v232_v24 = vld [vmem:[%s462_s2] ss:$0 sm:$0xff]  ;;  %s350_s0 = smov [#allocation2]  }
   0xc   :  { %s221_s2 = sshll.u32 %s350_s0, 4  ;;  %s222_s2 = int_to_ptr.vmem [resolvable:$true] %s221_s2 }
   0xd   :  { %310 = vmatpush3.bf16.msra.mxu0 %v307_v10  ;;  %321 = vmatpush3.bf16.msra.mxu1 %v307_v10  ;;  %s326_s26 = scalar_lea.vmem %s222_s2, 1536  ;;  %p331_p1 = scmp.lt.s32.totalorder %s222_s2, %s222_s2 }
   0xe   :  { %312 = vmatprep.subr.bf16.mxu0 %v311_v13  ;;  %318 = vmatprep.subr.bf16.mxu1 %v311_v13  ;;  %p327_p0 = scmp.ne.s32.totalorder %s222_s2, %s326_s26  ;;  %p332_p2 = scmp.lt.s32.totalorder %s326_s26, %s326_s26 }
  0x10   :  { %p333_p3 = por %p332_p2, %p331_p1 }
  0x11   :  { %314 = vmatpush3.bf16.msra.mxu0 %v311_v13  ;;  %322 = vmatpush3.bf16.msra.mxu1 %v311_v13 }
  0x12   :  { %p334_p4 = pnand %p333_p3, %p327_p0 }
  0x14   :  { %282 = vmatmul.mubr.msk.f32.vlgmr.msra.gmra.mrb[0].mxu0 %vm42_vm0, %v16_v14  ;;  %291 = vmatmul.mubr.msk.f32.vlgmr.msra.gmra.mrb[0].mxu1 %vm42_vm0, %v22_v15 }
  0x15   :  { %284 = vmatprep.mubr.msk.f32.mxu0 %vm42_vm0, %v17_v16  ;;  %293 = vmatprep.mubr.msk.f32.mxu1 %vm42_vm0, %v23_v17 }
  0x18   :  { %285 = vmatmul.mubr.msk.f32.gmra.mrb[2].mxu0 %vm42_vm0, %v18_v18  ;;  %294 = vmatmul.mubr.msk.f32.gmra.mrb[2].mxu1 %vm42_vm0, %v24_v19 }
  0x19   :  { %287 = vmatprep.mubr.msk.f32.mxu0 %vm42_vm0, %v19_v20  ;;  %296 = vmatprep.mubr.msk.f32.mxu1 %vm42_vm0, %v25_v21 }
  0x1c   :  { %288 = vmatmul.mubr.msk.f32.gmra.mrb[4].mxu0 %vm42_vm0, %v20_v22  ;;  %297 = vmatmul.mubr.msk.f32.gmra.mrb[4].mxu1 %vm42_vm0, %v26_v23 }
  0xe7   :  { %v283_v25 = vpop.f32.mrb[0].mxu0  ;;  %v292_v26 = vpop.f32.mrb[0].mxu1 }
  0xe8   :  { %v151_v27 = vadd.f32 %v283_v25, %v232_v24  ;;  %v181_v28 = vadd.f32 %v292_v26, %v232_v24  ;;  %v145_v29 = vpop.f32.mrb[1].mxu0  ;;  %v175_v30 = vpop.f32.mrb[1].mxu1 }
  0xe9   :  { %v146_v31 = vadd.f32 %v232_v24, %v145_v29  ;;  %v176_v32 = vadd.f32 %v232_v24, %v175_v30 }
  0xea   :  { %205 = vst [vmem:[#allocation2 + $0x8] sm:$0xff] %v151_v27  ;;  %211 = vst [vmem:[#allocation2 + $0x38] sm:$0xff] %v181_v28 }
  0xeb   :  { %204 = vst [vmem:[#allocation2] sm:$0xff] %v146_v31  ;;  %210 = vst [vmem:[#allocation2 + $0x30] sm:$0xff] %v176_v32  ;;  %v286_v33 = vpop.f32.mrb[2].mxu0  ;;  %v295_v34 = vpop.f32.mrb[2].mxu1 }
  0xec   :  { %v161_v35 = vadd.f32 %v286_v33, %v232_v24  ;;  %v191_v36 = vadd.f32 %v295_v34, %v232_v24  ;;  %v155_v37 = vpop.f32.mrb[3].mxu0  ;;  %v185_v38 = vpop.f32.mrb[3].mxu1 }
  0xed   :  { %v156_v39 = vadd.f32 %v232_v24, %v155_v37  ;;  %v186_v40 = vadd.f32 %v232_v24, %v185_v38 }
  0xee   :  { %207 = vst [vmem:[#allocation2 + $0x18] sm:$0xff] %v161_v35  ;;  %213 = vst [vmem:[#allocation2 + $0x48] sm:$0xff] %v191_v36 }
  0xef   :  { %206 = vst [vmem:[#allocation2 + $0x10] sm:$0xff] %v156_v39  ;;  %212 = vst [vmem:[#allocation2 + $0x40] sm:$0xff] %v186_v40  ;;  %v289_v41 = vpop.f32.mrb[4].mxu0  ;;  %v298_v42 = vpop.f32.mrb[4].mxu1 }
  0xf0   :  { %v171_v43 = vadd.f32 %v289_v41, %v232_v24  ;;  %v201_v44 = vadd.f32 %v298_v42, %v232_v24  ;;  %v165_v45 = vpop.f32.mrb[5].mxu0  ;;  %v195_v46 = vpop.f32.mrb[5].mxu1 }
  0xf1   :  { %v166_v47 = vadd.f32 %v232_v24, %v165_v45  ;;  %v196_v48 = vadd.f32 %v232_v24, %v195_v46 }
  0xf2   :  { %209 = vst [vmem:[#allocation2 + $0x28] sm:$0xff] %v171_v43  ;;  %215 = vst [vmem:[#allocation2 + $0x58] sm:$0xff] %v201_v44 }
  0xf3   :  { %208 = vst [vmem:[#allocation2 + $0x20] sm:$0xff] %v166_v47  ;;  %214 = vst [vmem:[#allocation2 + $0x50] sm:$0xff] %v196_v48 }
  0xf4   :  { %337 = shalt.err (!%p334_p4)
}
  0xf5   :  { %s338_s29 = scalar_lea.hbm %s463_s3, 1536 }
  0xf6   :  { %p339_p5 = scmp.ne.s32.totalorder %s463_s3, %s338_s29  ;;  %p342_p6 = scmp.lt.u32.totalorder %s338_s29, %s463_s3 }
  0xf8   :  { %p344_p7 = pnand %p342_p6, %p339_p5 }
  0xfa   :  { %347 = shalt.err (!%p344_p7)
}
  0xfb   :  { %s351_s1 = smov 128   ;;  %s352_s7 = smov 8  }
  0xfc   :  { %227 = dma.vmem_to_hbm [thread:$0]  %s222_s2, 1536, %s463_s3, [#allocation3], %s351_s1, %s351_s1, %s352_s7  }
  0xfd   :  { %348 = dma.done.wait [#allocation3], 1536  }
  0xfe   :  { %349 = vsyncadd [#allocation3], 4294965760 }
  0xff   :  { %231 = vsyncpa [#allocation3], 1 }

</bundles_post_ra>
